<compile_context>
chip_gen: v5e
topology: v5e:2x2
jax: 0.10.0
libtpu: 0.0.40
codegen_flags: <defaults>
</compile_context>

<pallas_src>
import jax
import jax.numpy as jnp
from jax.experimental import pallas as pl
from jax.experimental.pallas import tpu as pltpu


def _make_hier_reduce_kernel(C, tc):
    """Kernel closure over the static channel count C and channel tile tc."""
    needs_mask = (C % tc) != 0  # only the last C-block can carry padded rows

    def kernel(x_ref, o_ref, acc_ref):
        # x_ref: (TN, TC, TL) input tile; o_ref: (TN, TL); acc_ref: (TN, TL) f32.
        k = pl.program_id(2)

        @pl.when(k == 0)
        def _init():
            acc_ref[...] = jnp.zeros_like(acc_ref)

        x = x_ref[...].astype(jnp.float32)
        if needs_mask:
            # Partial edge blocks along the reduction axis contain undefined
            # data; zero the invalid channels before accumulating.
            valid = C - k * tc
            ch = jax.lax.broadcasted_iota(jnp.int32, x.shape, 1)
            x = jnp.where(ch < valid, x, 0.0)

        # Channel-axis reduction (axis=1) == transpose(1,2) + sum(dim=-1).
        acc_ref[...] += jnp.sum(x, axis=1)

        @pl.when(k == pl.num_programs(2) - 1)
        def _finalize():
            o_ref[...] = acc_ref[...].astype(o_ref.dtype)

    return kernel


def _choose_tiles(N, C, L, itemsize, vmem_budget=20 * 1024 * 1024):
    """Pick (TN, TC, TL) so the double-buffered working set fits comfortably
    in scoped VMEM on every generation while keeping stores lane-dense.

    TN: full N if small, else 8 (sublane multiple -> legal output block).
    TL: multiple of 128 (lane-dense) or the full L when L <= 128.
    TC: full C when it fits; otherwise the largest multiple of 8 that fits
        (reduction is then tiled across the grid's last axis).
    """
    tn = N if N <= 8 else 8
    tl = L if L <= 128 else min(2048, (L // 128) * 128)

    def working_set(tc, tl):
        # 2x double-buffered input tile + 2x output tile + f32 accumulator.
        return (2 * tn * tc * tl * itemsize
                + 2 * tn * tl * itemsize
                + tn * tl * 4)

    tc = C
    # First shrink the lane tile (stays lane-dense down to 128 lanes).
    while tl > 128 and working_set(tc, tl) > vmem_budget:
        tl -= 128
    # For very large channel counts, tile the channel (reduction) axis too.
    if working_set(tc, tl) > vmem_budget:
        fixed = 2 * tn * tl * itemsize + tn * tl * 4
        per_chan = 2 * tn * tl * itemsize
        tc = max(8, ((vmem_budget - fixed) // per_chan) // 8 * 8)
        tc = min(tc, C)
    return tn, tc, tl


def hierarchy_reduction_1d(x, slices, tiles=None):
    """x: (N, C, L) array. slices: list of (i, j) static Python ints.

    Returns a Python list of arrays; piece k has shape (j_k - i_k, L, 1).
    `tiles=(tn, tc, tl)` overrides the automatic tile choice (testing hook).
    """
    N, C, L = x.shape
    itemsize = jnp.dtype(x.dtype).itemsize
    tn, tc, tl = tiles if tiles is not None else _choose_tiles(N, C, L, itemsize)

    reduced = pl.pallas_call(
        _make_hier_reduce_kernel(C, tc),
        out_shape=jax.ShapeDtypeStruct((N, L), x.dtype),
        grid=(pl.cdiv(N, tn), pl.cdiv(L, tl), pl.cdiv(C, tc)),
        in_specs=[pl.BlockSpec((tn, tc, tl), lambda n, l, c: (n, c, l))],
        out_specs=pl.BlockSpec((tn, tl), lambda n, l, c: (n, l)),
        scratch_shapes=[pltpu.VMEM((tn, tl), jnp.float32)],
        compiler_params=pltpu.CompilerParams(
            dimension_semantics=("parallel", "parallel", "arbitrary"),
            vmem_limit_bytes=32 * 1024 * 1024),
    )(x)

    # keepdim=True trailing axis, added once on the contiguous (N, L) result so
    # the kernel output stays lane-dense and no per-piece reshape is scheduled.
    reduction = reduced[..., None]  # (N, L, 1)

    # TODO(synk): torch.nested.nested_tensor has no Pallas/JAX equivalent; the
    # ragged batch slices are returned as a plain Python list of arrays.
    return [reduction[i:j] for (i, j) in slices]


if __name__ == "__main__":
    def ref_reduce(x):
        r = jnp.sum(jnp.transpose(x, (0, 2, 1)).astype(jnp.float32),
                    axis=-1, keepdims=True)
        return r.astype(x.dtype)

    def check(x, slices, level, atol, rtol):
        ref = ref_reduce(x)
        good = True
        for (i, j), piece in zip(slices, level):
            if piece.shape != (j - i, x.shape[2], 1):
                good = False
            if not jnp.allclose(piece.astype(jnp.float32),
                                ref[i:j].astype(jnp.float32),
                                atol=atol, rtol=rtol):
                good = False
        return good

    ok = True

    # Case 1: small demo shapes (single grid point, full-dim blocks).
    N, C, L = 6, 4, 16
    x1 = jax.random.normal(jax.random.PRNGKey(0), (N, C, L), dtype=jnp.float32)
    slices1 = [(0, 2), (2, 5), (5, 6)]
    level1 = hierarchy_reduction_1d(x1, slices1)
    for piece in level1:
        jax.block_until_ready(piece)
    ok &= check(x1, slices1, level1, atol=1e-5, rtol=1e-5)

    # Case 2: bf16 input exercising the tiled (N, L) grid path with a partial
    # edge block along N and f32 in-kernel accumulation.
    N2, C2, L2 = 10, 8, 1152
    x2 = jax.random.normal(jax.random.PRNGKey(1), (N2, C2, L2),
                           dtype=jnp.float32).astype(jnp.bfloat16)
    slices2 = [(0, 3), (3, 10)]
    level2 = hierarchy_reduction_1d(x2, slices2)
    for piece in level2:
        jax.block_until_ready(piece)
    ok &= check(x2, slices2, level2, atol=5e-2, rtol=5e-2)

    # Case 3: forced small tiles exercising the channel-tiled (masked) reduction
    # path plus partial blocks along every grid axis.
    N3, C3, L3 = 10, 12, 256
    x3 = jax.random.normal(jax.random.PRNGKey(2), (N3, C3, L3), dtype=jnp.float32)
    slices3 = [(0, 4), (4, 9), (9, 10)]
    level3 = hierarchy_reduction_1d(x3, slices3, tiles=(8, 8, 128))
    for piece in level3:
        jax.block_until_ready(piece)
    ok &= check(x3, slices3, level3, atol=1e-5, rtol=1e-5)

    print("KERNEL_OK" if ok else "KERNEL_MISMATCH")
</pallas_src>

<mosaic_0001>
module attributes {stable_mosaic.version = 11 : i64} {
  func.func @kernel(%arg0: i32, %arg1: i32, %arg2: i32, %arg3: memref<6x4x16xf32, #tpu.memory_space<vmem>>, %arg4: memref<6x16xf32, #tpu.memory_space<vmem>>, %arg5: memref<6x16xf32, #tpu.memory_space<vmem>>) attributes {dimension_semantics = [#tpu.dimension_semantics<parallel>, #tpu.dimension_semantics<parallel>, #tpu.dimension_semantics<arbitrary>], iteration_bounds = array<i64: 1, 1, 1>, scalar_prefetch = 0 : i64, scratch_operands = 1 : i64, tpu.core_type = #tpu.core_type<tc>, window_params = [{transform_indices = @transform_0, window_bounds = array<i64: 6, 4, 16>}, {transform_indices = @transform_1, window_bounds = array<i64: 6, 16>}]} {
    %c0_i32 = arith.constant 0 : i32
    %0 = arith.cmpi eq, %arg2, %c0_i32 : i32
    %1 = arith.extui %0 : i1 to i32
    %c0_i32_0 = arith.constant 0 : i32
    %2 = arith.cmpi ne, %1, %c0_i32_0 : i32
    scf.if %2 {
      %cst_9 = arith.constant 0.000000e+00 : f32
      %11 = vector.broadcast %cst_9 : f32 to vector<6x16xf32>
      %c0_10 = arith.constant 0 : index
      %c0_11 = arith.constant 0 : index
      %12 = vector.load %arg5[%c0_10, %c0_11] : memref<6x16xf32, #tpu.memory_space<vmem>>, vector<6x16xf32>
      tpu.vector_store %arg5[%c0_10, %c0_11], %11 {strides = array<i32>} : memref<6x16xf32, #tpu.memory_space<vmem>>, vector<6x16xf32>,
    } else {
    }
    %c0 = arith.constant 0 : index
    %c0_1 = arith.constant 0 : index
    %c0_2 = arith.constant 0 : index
    %3 = vector.load %arg3[%c0, %c0_1, %c0_2] : memref<6x4x16xf32, #tpu.memory_space<vmem>>, vector<6x4x16xf32>
    %c0_3 = arith.constant 0 : index
    %c0_4 = arith.constant 0 : index
    %4 = vector.load %arg5[%c0_3, %c0_4] : memref<6x16xf32, #tpu.memory_space<vmem>>, vector<6x16xf32>
    %cst = arith.constant dense<0.000000e+00> : vector<6x16xf32>
    %5 = vector.multi_reduction <add>, %3, %cst [1] : vector<6x4x16xf32> to vector<6x16xf32>
    %6 = arith.addf %4, %5 : vector<6x16xf32>
    %c0_5 = arith.constant 0 : index
    %c0_6 = arith.constant 0 : index
    %7 = vector.load %arg5[%c0_5, %c0_6] : memref<6x16xf32, #tpu.memory_space<vmem>>, vector<6x16xf32>
    tpu.vector_store %arg5[%c0_5, %c0_6], %6 {strides = array<i32>} : memref<6x16xf32, #tpu.memory_space<vmem>>, vector<6x16xf32>,
    %c0_i32_7 = arith.constant 0 : i32
    %8 = arith.cmpi eq, %arg2, %c0_i32_7 : i32
    %9 = arith.extui %8 : i1 to i32
    %c0_i32_8 = arith.constant 0 : i32
    %10 = arith.cmpi ne, %9, %c0_i32_8 : i32
    scf.if %10 {
      %c0_9 = arith.constant 0 : index
      %c0_10 = arith.constant 0 : index
      %11 = vector.load %arg5[%c0_9, %c0_10] : memref<6x16xf32, #tpu.memory_space<vmem>>, vector<6x16xf32>
      %c0_11 = arith.constant 0 : index
      %c0_12 = arith.constant 0 : index
      %12 = vector.load %arg4[%c0_11, %c0_12] : memref<6x16xf32, #tpu.memory_space<vmem>>, vector<6x16xf32>
      tpu.vector_store %arg4[%c0_11, %c0_12], %11 {strides = array<i32>} : memref<6x16xf32, #tpu.memory_space<vmem>>, vector<6x16xf32>,
    } else {
    }
    return
  }
  func.func @transform_0(%arg0: i32, %arg1: i32, %arg2: i32) -> (i32, i32, i32) {
    %c0_i32 = arith.constant 0 : i32
    return %arg0, %arg2, %arg1 : i32, i32, i32
  }
  func.func @transform_1(%arg0: i32, %arg1: i32, %arg2: i32) -> (i32, i32) {
    %c0_i32 = arith.constant 0 : i32
    return %arg0, %arg1 : i32, i32
  }
}

</mosaic_0001>

<bundles_post_ra>
// kernel: tpu_custom_call.1
= control target key start
LH: loop header
LB: loop body
LE: loop exit
PB: predicated region body
PF: predicated region fallthrough
CT: control target
= control target key end

     0   :  { %6 = vsyncpa [#allocation4], 0  ;;  %s210_s0 = inlined_call_operand.hbm [shape: f32[6,4,16], index: 0, kind: input, shape index: {}]   ;;  %s211_s1 = inlined_call_operand.hbm [shape: f32[6,16], index: 1, kind: output, shape index: {}]  }
   0x1   :  { %7 = vsyncpa [#allocation5], 0  ;;  %s12_s8 = sshll.u32 %s210_s0, 4  ;;  %s180_s9 = smov [#allocation3]   ;;  %s13_s8 = int_to_ptr.hbm [resolvable:$true] %s12_s8 }
   0x2   :  { %s14_s10 = sshll.u32 %s180_s9, 4  ;;  %s181_s11 = smov 64   ;;  %s15_s10 = int_to_ptr.vmem [resolvable:$true] %s14_s10 }
   0x3   :  { %s182_s12 = smov 4  }
   0x4   :  { %20 = dma.hbm_to_vmem [thread:$0]  %s13_s8, 384, %s15_s10, [#allocation4], %s181_s11, %s181_s11, %s182_s12  }
   0x5   :  { %176 = dma.done.wait [#allocation4], 384  }
   0x6   :  { %177 = vsyncadd [#allocation4], 4294966912  ;;  %vm29_vm0 = vcmask 128000   ;;  %v183_v0 = vmov 0.0   ;;  %vm38_vm1 = vcmask 125952   ;;  %vm87_vm2 = vcmask 1041409  }
   0x7   :  { %30 = vst.msk [vmem:[#allocation2] sm:$0x3f] %vm29_vm0, %v183_v0  ;;  %v31_v1 = vld [vmem:[#allocation3] sm:$0xf]  ;;  %v32_v2 = vld [vmem:[#allocation3 + $0x4] sm:$0xf] }
   0x8   :  { %v33_v3 = vld [vmem:[#allocation3 + $0x8] sm:$0xf]  ;;  %v34_v4 = vld [vmem:[#allocation3 + $0xc] sm:$0xf]  ;;  %v35_v5 = vld [vmem:[#allocation3 + $0x10] sm:$0xf] }
   0x9   :  { %v36_v6 = vld [vmem:[#allocation3 + $0x14] sm:$0xf]  ;;  %v39_v7 = vsel %vm38_vm1, %v31_v1, 0.0  ;;  %v46_v8 = vsel %vm38_vm1, %v32_v2, 0.0  ;;  %v53_v9 = vsel %vm38_vm1, %v33_v3, 0.0  ;;  %v60_v10 = vsel %vm38_vm1, %v34_v4, 0.0 }
   0xa   :  { %v40_v11 = vrot.slane %v39_v7, 4  ;;  %v47_v12 = vrot.slane %v46_v8, 4  ;;  %v54_v13 = vrot.slane %v53_v9, 4  ;;  %v61_v14 = vrot.slane %v60_v10, 4  ;;  %s184_s0 = smov [#allocation6]   ;;  %s113_s16 = sshll.u32 %s211_s1, 4  ;;  %s114_s16 = int_to_ptr.hbm [resolvable:$true] %s113_s16 }
   0xb   :  { %v67_v15 = vsel %vm38_vm1, %v35_v5, 0.0  ;;  %v74_v16 = vsel %vm38_vm1, %v36_v6, 0.0  ;;  %vm89_vm3 = vcmask 1042434   ;;  %vm91_vm4 = vcmask 1043459   ;;  %s111_s13 = sshll.u32 %s184_s0, 4  ;;  %s112_s13 = int_to_ptr.vmem [resolvable:$true] %s111_s13 }
   0xc   :  { %v41_v17 = vadd.f32 %v40_v11, %v39_v7  ;;  %v48_v18 = vadd.f32 %v47_v12, %v46_v8  ;;  %v55_v19 = vadd.f32 %v54_v13, %v53_v9  ;;  %v62_v20 = vadd.f32 %v61_v14, %v60_v10 }
   0xd   :  { %v68_v21 = vrot.slane %v67_v15, 4  ;;  %v75_v22 = vrot.slane %v74_v16, 4  ;;  %vm93_vm5 = vcmask 1044484   ;;  %vm95_vm6 = vcmask 1045509  }
   0xe   :  { %v42_v23 = vrot.slane %v41_v17, 2  ;;  %v49_v24 = vrot.slane %v48_v18, 2  ;;  %v56_v25 = vrot.slane %v55_v19, 2  ;;  %v63_v26 = vrot.slane %v62_v20, 2  ;;  %v37_v51 = vld [vmem:[#allocation2] sm:$0x3f] }
   0xf   :  { %v69_v27 = vadd.f32 %v68_v21, %v67_v15  ;;  %v76_v28 = vadd.f32 %v75_v22, %v74_v16 }
  0x10   :  { %v43_v29 = vadd.f32 %v42_v23, %v41_v17  ;;  %v50_v30 = vadd.f32 %v49_v24, %v48_v18  ;;  %v57_v31 = vadd.f32 %v56_v25, %v55_v19  ;;  %v64_v32 = vadd.f32 %v63_v26, %v62_v20 }
  0x11   :  { %v70_v33 = vrot.slane %v69_v27, 2  ;;  %v77_v34 = vrot.slane %v76_v28, 2 }
  0x12   :  { %v44_v35 = vrot.slane %v43_v29, 1  ;;  %v51_v36 = vrot.slane %v50_v30, 1  ;;  %v58_v37 = vrot.slane %v57_v31, 1  ;;  %v65_v38 = vrot.slane %v64_v32, 1 }
  0x13   :  { %v71_v39 = vadd.f32 %v70_v33, %v69_v27  ;;  %v78_v40 = vadd.f32 %v77_v34, %v76_v28 }
  0x14   :  { %v45_v41 = vadd.f32 %v44_v35, %v43_v29  ;;  %v52_v42 = vadd.f32 %v51_v36, %v50_v30  ;;  %v59_v43 = vadd.f32 %v58_v37, %v57_v31  ;;  %v66_v44 = vadd.f32 %v65_v38, %v64_v32 }
  0x15   :  { %v72_v45 = vrot.slane %v71_v39, 1  ;;  %v79_v46 = vrot.slane %v78_v40, 1 }
  0x16   :  { %v88_v47 = vsel %vm87_vm2, %v52_v42, %v45_v41 }
  0x17   :  { %v73_v48 = vadd.f32 %v72_v45, %v71_v39  ;;  %v80_v49 = vadd.f32 %v79_v46, %v78_v40  ;;  %v90_v50 = vsel %vm89_vm3, %v59_v43, %v88_v47 }
  0x18   :  { %v92_v52 = vsel %vm91_vm4, %v66_v44, %v90_v50 }
  0x19   :  { %v94_v53 = vsel %vm93_vm5, %v73_v48, %v92_v52 }
  0x1a   :  { %v96_v54 = vsel %vm95_vm6, %v80_v49, %v94_v53 }
  0x1b   :  { %v98_v55 = vadd.f32 %v96_v54, %v37_v51 }
  0x1d   :  { %100 = vst.msk [vmem:[#allocation2] sm:$0x3f] %vm29_vm0, %v98_v55 }
  0x24   :  { %v104_v56 = vld [vmem:[#allocation2] sm:$0x3f] }
  0x25   :  { %105 = vst.msk [vmem:[#allocation6] sm:$0x3f] %vm29_vm0, %v104_v56 }
  0x26   :  { %116 = dma.vmem_to_hbm [thread:$0]  %s112_s13, 128, %s114_s16, [#allocation5]  }
  0x27   :  { %178 = dma.done.wait [#allocation5], 128  }
  0x28   :  { %179 = vsyncadd [#allocation5], 4294967168 }
  0x29   :  { %121 = vsyncpa [#allocation4], 1 }
  0x2a   :  { %122 = vsyncpa [#allocation5], 1 }

</bundles_post_ra>
